<compile_context>
chip_gen: v7x
topology: tpu7x:2x2x1
jax: 0.10.0
libtpu: 0.0.40
codegen_flags: <defaults>
</compile_context>

<pallas_src>
import jax
import jax.numpy as jnp
from jax.experimental import pallas as pl
from jax.experimental.pallas import tpu as pltpu

_MIB = 1024 * 1024


def _round_up(x, m):
    return (x + m - 1) // m * m


def _vmem_capacity_bytes():
    try:
        return int(pltpu.get_tpu_info().vmem_capacity_bytes)
    except Exception:
        return 64 * _MIB  # conservative (v7x per-TensorCore)


def _k_tile(P, vmem_cap):
    """K tile / padded-K extent.  Full-extent single K block when it fits."""
    tk_cap = 2048 if vmem_cap > 96 * _MIB else 1024   # v5e/v6e vs v7x
    if P <= tk_cap:
        return P, P                                    # no K padding, no accumulator
    tk = tk_cap                                        # multiple of 128 -> legal tiled last dim
    return tk, _round_up(P, tk)


# --------------------------------------------------------------------------- #
# Kernels
# --------------------------------------------------------------------------- #
def _kernel_single_k(x_ref, w_ref, b_ref, o_ref):
    """K fits one block: out = x @ W_fused + b_fused, no scratch accumulator."""
    acc = jnp.dot(x_ref[...], w_ref[...], preferred_element_type=jnp.float32)
    o_ref[...] = (acc + b_ref[...].astype(jnp.float32)).astype(o_ref.dtype)


def _kernel_multi_k(x_ref, w_ref, b_ref, o_ref, acc_ref):
    """Tiled K reduction with f32 VMEM accumulator (K axis innermost)."""
    k = pl.program_id(2)

    @pl.when(k == 0)
    def _init():
        acc_ref[...] = jnp.zeros_like(acc_ref)

    acc_ref[...] += jnp.dot(x_ref[...], w_ref[...],
                            preferred_element_type=jnp.float32)

    @pl.when(k == pl.num_programs(2) - 1)
    def _finalize():
        o_ref[...] = (acc_ref[...]
                      + b_ref[...].astype(jnp.float32)).astype(o_ref.dtype)


# --------------------------------------------------------------------------- #
# One-time parameter packing (hoisted out of the per-call hot path)
# --------------------------------------------------------------------------- #
def prepare_layer_norm_hypernet(wg_w, wg_b, bg_w, bg_b, *, compute_dtype=None):
    """Fuse/pad/cast the two heads' parameters ONCE.

    wg_w/bg_w: (P, D), already transposed for x @ W; wg_b/bg_b: (D,) or (1, D).
    compute_dtype: e.g. jnp.bfloat16 to halve weight-streaming HBM bytes
    (recommended on bandwidth-bound parts; keeps f32 MXU accumulation).
    """
    P, D = wg_w.shape
    assert bg_w.shape == (P, D)

    vmem_cap = _vmem_capacity_bytes()
    tk, Kp = _k_tile(P, vmem_cap)

    Dp = _round_up(D, 128)         # per-head lane padding -> tile-aligned head split
    Np = 2 * Dp

    w_dtype = compute_dtype if compute_dtype is not None else wg_w.dtype
    w_fused = jnp.zeros((Kp, Np), w_dtype)
    w_fused = w_fused.at[:P, :D].set(wg_w.astype(w_dtype))
    w_fused = w_fused.at[:P, Dp:Dp + D].set(bg_w.astype(w_dtype))

    b_fused = jnp.zeros((1, Np), jnp.float32)
    b_fused = b_fused.at[0, :D].set(jnp.reshape(wg_b, (D,)).astype(jnp.float32))
    b_fused = b_fused.at[0, Dp:Dp + D].set(jnp.reshape(bg_b, (D,)).astype(jnp.float32))

    return dict(w=w_fused, b=b_fused, P=P, D=D, Dp=Dp, Kp=Kp, tk=tk,
                vmem_cap=vmem_cap, compute_dtype=compute_dtype)


# --------------------------------------------------------------------------- #
# Forward: (weight_generator(x), bias_generator(x))
# --------------------------------------------------------------------------- #
def layer_norm_hypernet(x, params):
    B, P = x.shape
    assert P == params["P"], "input feature dim does not match prepared params"
    D, Dp, Kp, tk = params["D"], params["Dp"], params["Kp"], params["tk"]
    w_fused, b_fused = params["w"], params["b"]
    vmem_cap = params["vmem_cap"]
    Np = 2 * Dp
    out_dtype = x.dtype

    if params["compute_dtype"] is not None:
        x = x.astype(params["compute_dtype"])

    # ---- M tile: full-extent single block when B is small (no row padding);
    # tm = 512 for large B so each fetched weight tile amortizes over more rows.
    TM_CAP = 512
    if B <= TM_CAP:
        tm, Mp = B, B
    else:
        tm, Mp = TM_CAP, _round_up(B, TM_CAP)

    x_it = jnp.dtype(x.dtype).itemsize
    w_it = jnp.dtype(w_fused.dtype).itemsize
    o_it = jnp.dtype(out_dtype).itemsize
    nk = Kp // tk
    budget = int(vmem_cap * 0.55)          # double-buffered footprint budget

    def footprint(tn):
        fp = 2 * tm * tk * x_it            # x tiles (double-buffered)
        fp += 2 * tk * tn * w_it           # fused weight tiles (double-buffered)
        fp += 2 * tn * 4                   # fused bias
        fp += 2 * tm * tn * o_it           # output tiles
        if nk > 1:
            fp += tm * tn * 4              # f32 accumulator
        return fp

    # ---- N tile: largest divisor of Np that fits the budget; when M has a
    # single block, keep >= 2 N blocks so both TCs on 2-TC parts get work.
    need_two = (Mp // tm == 1) and (Np >= 256)
    tn = 128
    for cand in (1024, 512, 256, 128):
        if Np % cand:
            continue
        if need_two and Np // cand < 2:
            continue
        if footprint(cand) <= budget:
            tn = cand
            break

    # ---- pad the activation only if the tiling actually requires it.
    if (Mp, Kp) != (B, P):
        x = jnp.pad(x, ((0, Mp - B), (0, Kp - P)))

    grid_m, grid_n = Mp // tm, Np // tn

    cost = pl.CostEstimate(
        flops=2 * Mp * Kp * Np,
        transcendentals=0,
        bytes_accessed=int(Mp * Kp * x_it + grid_m * Kp * Np * w_it
                           + Np * 4 + Mp * Np * o_it),
    )

    vmem_limit = int(min(max(2 * footprint(tn) + 4 * _MIB, 32 * _MIB),
                         vmem_cap * 85 // 100))
    # NOTE: if xprof shows exposed weight DMA in the K loop, bump the weight
    # BlockSpec to pipeline_mode=pl.Buffered(3) (costs one extra tk*tn buffer).

    if nk == 1:
        # Fast path: no K grid axis, no scratch accumulator, no init/finalize.
        out_p = pl.pallas_call(
            _kernel_single_k,
            out_shape=jax.ShapeDtypeStruct((Mp, Np), out_dtype),
            grid_spec=pltpu.PrefetchScalarGridSpec(
                num_scalar_prefetch=0,
                grid=(grid_m, grid_n),
                in_specs=[
                    pl.BlockSpec((tm, Kp), lambda i, j: (i, 0)),   # x tile (full K)
                    pl.BlockSpec((Kp, tn), lambda i, j: (0, j)),   # fused weights
                    pl.BlockSpec((1, tn), lambda i, j: (0, j)),    # fused bias
                ],
                out_specs=pl.BlockSpec((tm, tn), lambda i, j: (i, j)),
            ),
            compiler_params=pltpu.CompilerParams(
                dimension_semantics=("parallel", "parallel"),
                vmem_limit_bytes=vmem_limit),
            cost_estimate=cost,
        )(x, w_fused, b_fused)
    else:
        out_p = pl.pallas_call(
            _kernel_multi_k,
            out_shape=jax.ShapeDtypeStruct((Mp, Np), out_dtype),
            grid_spec=pltpu.PrefetchScalarGridSpec(
                num_scalar_prefetch=0,
                grid=(grid_m, grid_n, nk),
                in_specs=[
                    pl.BlockSpec((tm, tk), lambda i, j, k: (i, k)),   # x tile
                    pl.BlockSpec((tk, tn), lambda i, j, k: (k, j)),   # fused weights
                    pl.BlockSpec((1, tn), lambda i, j, k: (0, j)),    # fused bias
                ],
                out_specs=pl.BlockSpec((tm, tn), lambda i, j, k: (i, j)),
                scratch_shapes=[pltpu.VMEM((tm, tn), jnp.float32)],
            ),
            compiler_params=pltpu.CompilerParams(
                dimension_semantics=("parallel", "parallel", "arbitrary"),
                vmem_limit_bytes=vmem_limit),
            cost_estimate=cost,
        )(x, w_fused, b_fused)

    # Head split: heads live at lane-tile-aligned offsets 0 and Dp, so these
    # slices never cross an (8,128) tile boundary (only trailing-pad removal).
    w_out = out_p[:B, :D]
    b_out = out_p[:B, Dp:Dp + D]
    return w_out, b_out


if __name__ == "__main__":
    # Module-consistent shapes: projection_dim P = 32, config.input_dim D = 32,
    # batch of task embeddings B = 2.
    B, P, D = 2, 32, 32
    key = jax.random.PRNGKey(0)
    k_x, k_wg, k_bg, k_wgb, k_bgb = jax.random.split(key, 5)

    bound = 1.0 / jnp.sqrt(P)
    wg_w_pt = jax.random.uniform(k_wg, (D, P), jnp.float32, -bound, bound)  # weight_generator.weight
    bg_w_pt = jax.random.uniform(k_bg, (D, P), jnp.float32, -bound, bound)  # bias_generator.weight
    wg_b = jax.random.uniform(k_wgb, (D,), jnp.float32, -bound, bound)      # weight_generator.bias
    bg_b = jax.random.uniform(k_bgb, (D,), jnp.float32, -bound, bound)      # bias_generator.bias
    wg_w = wg_w_pt.T   # (P, D) for x @ W layout
    bg_w = bg_w_pt.T   # (P, D)

    x = jax.random.normal(k_x, (B, P), jnp.float32)

    # One-time parameter packing (hoisted out of the per-call path).
    params = prepare_layer_norm_hypernet(wg_w, wg_b, bg_w, bg_b)

    w_out, b_out = layer_norm_hypernet(x, params)
    jax.block_until_ready((w_out, b_out))

    # Reference check (same semantics as the PyTorch module).
    w_ref = x @ wg_w + wg_b[None, :]
    b_ref = x @ bg_w + bg_b[None, :]
    assert w_out.shape == (B, D) and b_out.shape == (B, D)
    assert jnp.allclose(w_out, w_ref, atol=1e-5), "weight head mismatch"
    assert jnp.allclose(b_out, b_ref, atol=1e-5), "bias head mismatch"

    # Also exercise the tiled multi-K accumulator path (larger shapes).
    B2, P2, D2 = 300, 2100, 160
    k2 = jax.random.split(jax.random.PRNGKey(1), 5)
    bound2 = 1.0 / jnp.sqrt(P2)
    wg_w2 = jax.random.uniform(k2[0], (P2, D2), jnp.float32, -bound2, bound2)
    bg_w2 = jax.random.uniform(k2[1], (P2, D2), jnp.float32, -bound2, bound2)
    wg_b2 = jax.random.uniform(k2[2], (D2,), jnp.float32, -bound2, bound2)
    bg_b2 = jax.random.uniform(k2[3], (D2,), jnp.float32, -bound2, bound2)
    x2 = jax.random.normal(k2[4], (B2, P2), jnp.float32)

    params2 = prepare_layer_norm_hypernet(wg_w2, wg_b2, bg_w2, bg_b2)
    w2, b2 = layer_norm_hypernet(x2, params2)
    jax.block_until_ready((w2, b2))
    w2_ref = x2 @ wg_w2 + wg_b2[None, :]
    b2_ref = x2 @ bg_w2 + bg_b2[None, :]
    assert jnp.allclose(w2, w2_ref, rtol=2e-2, atol=2e-2), "tiled weight head mismatch"
    assert jnp.allclose(b2, b2_ref, rtol=2e-2, atol=2e-2), "tiled bias head mismatch"

    print("KERNEL_OK")
</pallas_src>

<mosaic_0001>
module attributes {stable_mosaic.version = 11 : i64} {
  func.func @_kernel_single_k(%arg0: i32, %arg1: i32, %arg2: memref<2x32xf32, #tpu.memory_space<vmem>>, %arg3: memref<32x128xf32, #tpu.memory_space<vmem>>, %arg4: memref<1x128xf32, #tpu.memory_space<vmem>>, %arg5: memref<2x128xf32, #tpu.memory_space<vmem>>) attributes {dimension_semantics = [#tpu.dimension_semantics<parallel>, #tpu.dimension_semantics<parallel>], iteration_bounds = array<i64: 1, 2>, scalar_prefetch = 0 : i64, scratch_operands = 0 : i64, tpu.core_type = #tpu.core_type<tc>, window_params = [{transform_indices = @transform_0, window_bounds = array<i64: 2, 32>}, {transform_indices = @transform_1, window_bounds = array<i64: 32, 128>}, {transform_indices = @transform_2, window_bounds = array<i64: 1, 128>}, {transform_indices = @transform_3, window_bounds = array<i64: 2, 128>}]} {
    %c0 = arith.constant 0 : index
    %c0_0 = arith.constant 0 : index
    %0 = vector.load %arg2[%c0, %c0_0] : memref<2x32xf32, #tpu.memory_space<vmem>>, vector<2x32xf32>
    %c0_1 = arith.constant 0 : index
    %c0_2 = arith.constant 0 : index
    %1 = vector.load %arg3[%c0_1, %c0_2] : memref<32x128xf32, #tpu.memory_space<vmem>>, vector<32x128xf32>
    %cst = arith.constant dense<0.000000e+00> : vector<2x128xf32>
    %2 = tpu.matmul %0, %1, %cst {dimension_numbers = #tpu.dot_dimension_numbers<[1], [0], [0], [1], [0, 0, 1, 1], [], []>} : vector<2x32xf32>, vector<32x128xf32>, vector<2x128xf32> -> vector<2x128xf32>
    %c0_3 = arith.constant 0 : index
    %c0_4 = arith.constant 0 : index
    %3 = vector.load %arg4[%c0_3, %c0_4] : memref<1x128xf32, #tpu.memory_space<vmem>>, vector<1x128xf32>
    %4 = vector.broadcast %3 : vector<1x128xf32> to vector<2x128xf32>
    %5 = arith.addf %2, %4 : vector<2x128xf32>
    %c0_5 = arith.constant 0 : index
    %c0_6 = arith.constant 0 : index
    %6 = vector.load %arg5[%c0_5, %c0_6] : memref<2x128xf32, #tpu.memory_space<vmem>>, vector<2x128xf32>
    tpu.vector_store %arg5[%c0_5, %c0_6], %5 {strides = array<i32>} : memref<2x128xf32, #tpu.memory_space<vmem>>, vector<2x128xf32>,
    return
  }
  func.func @transform_0(%arg0: i32, %arg1: i32) -> (i32, i32) {
    %c0_i32 = arith.constant 0 : i32
    %c0_i32_0 = arith.constant 0 : i32
    return %arg0, %c0_i32 : i32, i32
  }
  func.func @transform_1(%arg0: i32, %arg1: i32) -> (i32, i32) {
    %c0_i32 = arith.constant 0 : i32
    %c0_i32_0 = arith.constant 0 : i32
    return %c0_i32, %arg1 : i32, i32
  }
  func.func @transform_2(%arg0: i32, %arg1: i32) -> (i32, i32) {
    %c0_i32 = arith.constant 0 : i32
    %c0_i32_0 = arith.constant 0 : i32
    return %c0_i32, %arg1 : i32, i32
  }
  func.func @transform_3(%arg0: i32, %arg1: i32) -> (i32, i32) {
    %c0_i32 = arith.constant 0 : i32
    return %arg0, %arg1 : i32, i32
  }
}

</mosaic_0001>

<bundles_post_ra>
// kernel: tpu_custom_call.1
= control target key start
LH: loop header
LB: loop body
LE: loop exit
PB: predicated region body
PF: predicated region fallthrough
CT: control target
= control target key end

     0   :  { %8 = vsyncpa [#allocation3], 0  ;;  %s960_s0 = inlined_call_operand.hbm [shape: f32[2,32], index: 0, kind: input, shape index: {}]   ;;  %s961_s1 = inlined_call_operand.hbm [shape: f32[32,256], index: 1, kind: input, shape index: {}]   ;;  %s962_s2 = inlined_call_operand.vmem [shape: f32[1,256], index: 2, kind: input, shape index: {}]   ;;  %s963_s3 = inlined_call_operand.hbm [shape: f32[2,256], index: 3, kind: output, shape index: {}]  }
   0x1   :  { %9 = vsyncpa [#allocation6], 0 }
   0x2   :  { %11 = vsyncpa [#allocation6 + $0x1], 0 }
   0x3   :  { %12 = vsyncpa [#allocation4], 0 }
   0x4   :  { %14 = vsyncpa [#allocation4 + $0x1], 0  ;;  %s735_s12 = smov 0   ;;  %s737_s13 = smov 0  }
   0x5   :  { %s739_s14 = smov 0   ;;  %s741_s15 = smov 0  }
   0x6   :  { %s743_s16 = smov 0   ;;  %s745_s17 = smov 0  }
   0x7 LB: > { %s442_s18 = sadd.s32 4294967295, %s704_s17   ;;  %s443_s19 = sadd.s32 4294967294, %s704_s17   ;;  %s704_s17 = sphi %s745_s17, %s20_s17   ;;  %s700_s16 = sphi %s743_s16, %s991_s16   ;;  %s696_s15 = sphi %s741_s15, %s990_s15   ;;  %s692_s14 = sphi %s739_s14, %s989_s14   ;;  %s688_s13 = sphi %s737_s13, %s988_s13   ;;  %s684_s12 = sphi %s735_s12, %s987_s12  }
   0x8   : > { %s65_s20 = sadd.s32 1, %s692_s14  ;;  %p72_p0 = scmp.ne.s32.totalorder %s692_s14, %s688_s13 }
   0x9   : > { %p73_p1 = scmp.eq.s32.totalorder %s704_s17, 0  ;;  %p78_p2 = scmp.ne.s32.totalorder %s688_s13, %s684_s12 }
   0xa   : > { %p773_p3 = scmp.eq.s32.totalorder %s442_s18, 0  ;;  %p130_p4 = scmp.eq.s32.totalorder %s442_s18, 1 }
   0xb   : > { %p777_p5 = por %p73_p1, %p72_p0  ;;  %p136_p6 = scmp.eq.s32.totalorder %s443_s19, 1 }
   0xc   : > { %s970_s21 = scalar_select %p773_p3, 1, 0 }
   0xd   : > { %p783_p7 = por %p773_p3, %p78_p2  ;;  %p787_p8 = por %p130_p4, %p72_p0 }
   0xe   : > { %p791_p9 = por %p136_p6, %p78_p2  ;;  %p444_p10 = scmp.ge.s32.totalorder %s704_s17, 1 }
   0xf   : > { %s972_s23 = scalar_select %p783_p7, 1, 0 }
  0x10   : > { %s973_s24 = scalar_select %p787_p8, 1, 0 }
  0x11   : > { %s974_s25 = scalar_select %p791_p9, 1, 0 }
  0x12   : > { %p143_p11 = scmp.lt.s32.totalorder %s704_s17, 3  ;;  %s706_s27 = smov [#allocation2]  }
  0x13   : > { %s158_s28 = sshll.u32 %s706_s27, 4  ;;  %p502_p1 = scmp.lt.s32.totalorder %s704_s17, 2  ;;  %s159_s28 = int_to_ptr.vmem [resolvable:$true] %s158_s28 }
  0x14   : > { %p798_p13 = pnand %p444_p10, %p143_p11  ;;  %s29_s4 = sadd.s32 1, %s700_s16 }
  0x15   : > { %p807_p4 = pnand %p502_p1, %p777_p5  ;;  %p818_p6 = scmp.ge.s32.totalorder %s29_s4, 2 }
  0x16   : > { %s975_s26 = scalar_select %p798_p13, 1, 0 }
  0x17   : > { %p489_p0 = pneg %p798_p13  ;;  %s169_s6 = sand.u32 1, %s692_s14  }
  0x18   : > { %s976_s29 = scalar_select %p807_p4, 1, 0 }
  0x19   : > { %p813_p2 = pnand %p489_p0, %p773_p3  ;;  %s560_s9 = scalar_lea.hbm %s960_s0, 32 }
  0x1a   : > { %s978_s5 = scalar_select %p818_p6, 1, 0 }
  0x1b   : > { %p561_p5 = scmp.ne.s32.totalorder %s960_s0, %s560_s9  ;;  %p562_p10 = pneg %p813_p2 }
  0x1c   : > { %p567_p0 = scmp.lt.u32.totalorder %s560_s9, %s960_s0 }
  0x1d   : > { %p563_p11 = pnand %p562_p10, %p561_p5 }
  0x1f   : > { %p564_p1 = pneg %p563_p11 }
  0x21   : > { %p569_p12 = pnand %p567_p0, %p564_p1 }
  0x23   : > { %572 = shalt.err (!%p569_p12)
}
  0x24   : > { %s573_s22 = scalar_lea.vmem %s159_s28, 32  ;;  %p581_p3 = scmp.lt.s32.totalorder %s159_s28, %s159_s28 }
  0x25   : > { %p574_p9 = scmp.ne.s32.totalorder %s159_s28, %s573_s22  ;;  %p582_p13 = scmp.lt.s32.totalorder %s573_s22, %s573_s22 }
  0x27   : > { %p576_p8 = pnand %p574_p9, %p562_p10  ;;  %p583_p4 = por %p582_p13, %p581_p3 }
  0x29   : > { %p577_p7 = pneg %p576_p8 }
  0x2b   : > { %p584_p6 = pnand %p583_p4, %p577_p7 }
  0x2d   : > { %587 = shalt.err (!%p584_p6)
}
  0x2e   : > { %492 = dma.hbm_to_vmem [thread:$0]  (!%p813_p2), %s960_s0, 32, %s159_s28, [#allocation3]  }
  0x2f   : > { %p979_p9 = scmp.ne.s32.totalorder %s978_s5, 0  ;;  %s447_s8 = sshll.u32 %s169_s6, 5 }
  0x30   : > { %s448_s10 = sshll.u32 %s700_s16, 7  ;;  %s173_s19 = scalar_lea.vmem [#allocation5], %s447_s8 }
  0x31   : > { %s993_s4 = smov (%p979_p9, %s29_s4), 0  ;;  %s849_s18 = scalar_lea.hbm %s961_s1, %s448_s10 }
  0x32   : > { %s62_s9 = ssub.s32 %s700_s16, %s993_s4  ;;  %s179_s22 = sshll.u32 %s173_s19, 4  ;;  %s856_s22 = int_to_ptr.vmem [resolvable:$true] %s179_s22 }
  0x33   : > { %p63_p3 = scmp.eq.s32.totalorder %s62_s9, 0  ;;  %s858_s5 = scalar_lea.sflag [#allocation6], %s169_s6 }
  0x34   : > { %s588_s27 = scalar_lea.hbm %s849_s18, 512  ;;  %p980_p8 = scmp.ne.s32.totalorder %s976_s29, 0 }
  0x35   : > { %s854_s28 = scalar_select %p63_p3, %s692_s14, %s65_s20  }
  0x36   : > { %p589_p7 = scmp.ne.s32.totalorder %s849_s18, %s588_s27  ;;  %p590_p12 = pneg %p980_p8 }
  0x37   : > { %s593_s8 = scalar_lea.hbm %s961_s1, 1024  ;;  %p594_p2 = scmp.lt.u32.totalorder %s849_s18, %s961_s1 }
  0x38   : > { %p591_p13 = pnand %p590_p12, %p589_p7  ;;  %p595_p6 = scmp.lt.u32.totalorder %s593_s8, %s588_s27 }
  0x39   : > { %p597_p10 = scmp.lt.u32.totalorder %s588_s27, %s849_s18 }
  0x3a   : > { %p592_p4 = pneg %p591_p13  ;;  %p596_p5 = por %p595_p6, %p594_p2 }
  0x3c   : > { %p598_p11 = por %p597_p10, %p596_p5 }
  0x3e   : > { %p599_p1 = pnand %p598_p11, %p592_p4 }
  0x40   : > { %602 = shalt.err (!%p599_p1)
}
  0x41   : > { %s603_s20 = scalar_lea.vmem %s856_s22, 512  ;;  %s707_s6 = smov [#allocation5]  }
  0x42   : > { %p604_p0 = scmp.ne.s32.totalorder %s856_s22, %s603_s20  ;;  %s608_s11 = sshll.u32 %s707_s6, 4  ;;  %s609_s11 = int_to_ptr.vmem [resolvable:$false] %s608_s11 }
  0x43   : > { %s610_s19 = scalar_lea.vmem %s609_s11, 1024  ;;  %p611_p7 = scmp.lt.s32.totalorder %s856_s22, %s609_s11 }
  0x44   : > { %p606_p9 = pnand %p604_p0, %p590_p12  ;;  %p612_p13 = scmp.lt.s32.totalorder %s610_s19, %s603_s20 }
  0x46   : > { %p607_p3 = pneg %p606_p9  ;;  %p613_p2 = por %p612_p13, %p611_p7 }
  0x48   : > { %p614_p6 = pnand %p613_p2, %p607_p3 }
  0x4a   : > { %617 = shalt.err (!%p614_p6)
}
  0x4b   : > { %s708_s27 = smov 256   ;;  %s709_s7 = smov 128  }
  0x4c   : > { %s710_s9 = smov 8   ;;  %p981_p12 = scmp.ne.s32.totalorder %s975_s26, 0 }
  0x4d   : > { %496 = dma.hbm_to_vmem [thread:$0]  (!%p980_p8), %s849_s18, 512, %s856_s22, %s858_s5, %s708_s27, %s709_s7, %s710_s9  }
  0x4e   : > { %197 = sbr.rel (%p981_p12) target bundleno = 328 (0x148), region = 32  ;;  %p982_p4 = scmp.ne.s32.totalorder (!%p981_p12), %s970_s21, 0 }
  0x55   : > { %671 = dma.done.wait (%p982_p4), [#allocation3], 32  }
  0x56   : > { %673 = vsyncadd (%p982_p4), [#allocation3], 4294967264  ;;  %s893_s8 = sand.u32 1, %s688_s13   ;;  %p983_p5 = scmp.ne.s32.totalorder %s972_s23, 0 }
  0x57   : > { %s451_s10 = sshll.u32 %s893_s8, 5  ;;  %s204_s30 = scalar_lea.sflag [#allocation6], %s893_s8 }
  0x58   : > { %s207_s20 = scalar_lea.vmem [#allocation5], %s451_s10 }
  0x59   : > { %675 = dma.done.wait (%p983_p5), %s204_s30, 512  }
  0x5a   : > { %677 = vsyncadd (%p983_p5), %s204_s30, 4294966784  ;;  %v711_v0 = vmov 0.0|0.0   ;;  %vm712_vm0 = vmmov 0   ;;  %v713_v1 = vmov 0.0   ;;  %v237_v2 = vld [vmem:[%s207_s20] sm:$0xff]  ;;  %v238_v3 = vld [vmem:[%s207_s20 + $0x8] sm:$0xff] }
  0x5b   : > { %475 = vmatprep.subr.bf16.mxu0 %v711_v0  ;;  %472 = vmatprep.mubr.msk.f32.mxu0 %vm712_vm0, %v713_v1  ;;  %v239_v4 = vld [vmem:[%s207_s20 + $0x10] sm:$0xff]  ;;  %v476_v5 = vpack.c.bf16 %v238_v3, %v237_v2  ;;  %v240_v6 = vld [vmem:[%s207_s20 + $0x18] sm:$0xff]  ;;  %vm248_vm1 = vcmask 261120   ;;  %p233_p8 = scmp.lt.s32.totalorder %s696_s15, 1  ;;  %s452_s23 = sshll.u32 %s893_s8, 1 }
  0x5c   : > { %v479_v7 = vpack.c.bf16 %v240_v6, %v239_v4  ;;  %v236_v8 = vld [vmem:[#allocation2] sm:$0x3]  ;;  %s456_s22 = sshll.u32 %s696_s15, 5  ;;  %s232_s5 = scalar_lea.vmem [#allocation7], %s452_s23 }
  0x5d   : > { %477 = vmatpush3.bf16.msra.mxu0 %v476_v5  ;;  %s234_s21 = scalar_select %p233_p8, %s696_s15, 1 }
  0x5e   : > { %478 = vmatprep.subr.bf16.mxu0 %v711_v0  ;;  %s339_s6 = sshll.u32 %s232_s5, 4  ;;  %s911_s27 = scalar_lea.hbm %s963_s3, %s456_s22  ;;  %s913_s6 = int_to_ptr.vmem [resolvable:$true] %s339_s6 }
  0x5f   : > { %s235_s18 = scalar_lea.vmem %s962_s2, %s234_s21  ;;  %s324_s7 = scalar_lea.sflag [#allocation4], %s893_s8 }
  0x60   : > { %v453_v9 = vld [vmem:[%s235_s18] ss:$0 sm:$0xff]  ;;  %s618_s9 = scalar_lea.vmem %s913_s6, 32  ;;  %p984_p11 = scmp.ne.s32.totalorder %s973_s24, 0 }
  0x61   : > { %480 = vmatpush3.bf16.msra.mxu0 %v479_v7  ;;  %p619_p10 = scmp.ne.s32.totalorder %s913_s6, %s618_s9  ;;  %s714_s15 = smov [#allocation7]  }
  0x62   : > { %s622_s10 = sshll.u32 %s714_s15, 4  ;;  %s623_s10 = int_to_ptr.vmem [resolvable:$false] %s622_s10 }
  0x63   : > { %p620_p1 = pnand %p619_p10, %p984_p11  ;;  %s624_s30 = scalar_lea.vmem %s623_s10, 64 }
  0x64   : > { %473 = vmatmul.mubr.msk.f32.vlgmr.msra.gmra.mrb[0].mxu0 %vm248_vm1, %v236_v8  ;;  %p625_p9 = scmp.lt.s32.totalorder %s913_s6, %s623_s10  ;;  %p626_p3 = scmp.lt.s32.totalorder %s624_s30, %s618_s9 }
  0x65   : > { %p621_p0 = pneg %p620_p1 }
  0x66   : > { %p627_p7 = por %p626_p3, %p625_p9 }
  0x68   : > { %p628_p13 = pnand %p627_p7, %p621_p0 }
 0x137   : > { %v318_v10 = vpop.f32.mrb[0].mxu0 }
 0x138   : > { %v319_v11 = vadd.f32 %v453_v9, %v318_v10  ;;  %v474_v12 = vpop.f32.mrb[1].mxu0 }
 0x13a   : > { %322 = vst [vmem:[%s232_s5] sm:$0x3] %v319_v11 }
 0x13b   : > { %631 = shalt.err (!%p628_p13)
}
 0x13c   : > { %s632_s8 = scalar_lea.hbm %s911_s27, 32  ;;  %s636_s23 = scalar_lea.hbm %s963_s3, 64 }
 0x13d   : > { %p633_p2 = scmp.ne.s32.totalorder %s911_s27, %s632_s8  ;;  %p637_p4 = scmp.lt.u32.totalorder %s911_s27, %s963_s3 }
 0x13e   : > { %p638_p5 = scmp.lt.u32.totalorder %s636_s23, %s632_s8  ;;  %p640_p10 = scmp.lt.u32.totalorder %s632_s8, %s911_s27 }
 0x13f   : > { %p634_p6 = pnand %p633_p2, %p984_p11 }
 0x140   : > { %p639_p8 = por %p638_p5, %p637_p4 }
 0x141   : > { %p635_p12 = pneg %p634_p6 }
 0x142   : > { %p641_p1 = por %p640_p10, %p639_p8 }
 0x144   : > { %p642_p0 = pnand %p641_p1, %p635_p12 }
 0x146   : > { %645 = shalt.err (!%p642_p0)
}
 0x147   : > { %487 = dma.vmem_to_hbm [thread:$0]  (%p984_p11), %s913_s6, 32, %s911_s27, %s324_s7  }
 0x148 PF: > { %s351_s18 = sand.u32 1, %s684_s12   ;;  %p985_p9 = scmp.ne.s32.totalorder %s974_s25, 0 }
 0x149   : > { %p986_p3 = scmp.ge.s32.totalorder %s704_s17, 2  ;;  %s352_s22 = scalar_lea.sflag [#allocation4], %s351_s18 }
 0x14b   : > { %p498_p7 = pnand %p986_p3, %p985_p9 }
 0x14d   : > { %679 = dma.done.wait (!%p498_p7), %s352_s22, 32  }
 0x14e   : > { %681 = vsyncadd (!%p498_p7), %s352_s22, 4294967264  ;;  %s20_s17 = sadd.s32 1, %s704_s17   ;;  %s987_s12 = smov %s688_s13 }
 0x14f   : > { %p17_p13 = scmp.ge.s32.totalorder %s20_s17, 4   ;;  %s988_s13 = smov %s692_s14 }
 0x150   : > { %s989_s14 = smov %s854_s28  ;;  %s990_s15 = smov %s700_s16 }
 0x151   : > { %s991_s16 = smov %s993_s4  ;;  %19 = sbr.rel (!%p17_p13) target bundleno = 7 (0x7), region = 86 }
 0x158   :  { %357 = vsyncpa [#allocation3], 1 }
 0x159   :  { %359 = vsyncpa [#allocation3 + $0x1], 1 }
 0x15a   :  { %360 = vsyncpa [#allocation6], 1 }
 0x15b   :  { %362 = vsyncpa [#allocation6 + $0x1], 1 }
 0x15c   :  { %363 = vsyncpa [#allocation4], 1 }
 0x15d   :  { %365 = vsyncpa [#allocation4 + $0x1], 1 }

</bundles_post_ra>
